<compile_context>
chip_gen: v7x
topology: tpu7x:2x2x1
jax: 0.10.0
libtpu: 0.0.40
codegen_flags: <defaults>
</compile_context>

<pallas_src>
import jax
import jax.numpy as jnp
from jax.experimental import pallas as pl
from jax.experimental.pallas import tpu as pltpu


def _round_up(n, m):
    return ((n + m - 1) // m) * m


def _pad_to(a, shape):
    pads = [(0, s - d) for d, s in zip(a.shape, shape)]
    if all(p == (0, 0) for p in pads):
        return a
    return jnp.pad(a, pads)


def w2v_kernel(x_ref, w1t_ref, b1_ref, w2t_ref, out_ref, h_ref, hb_ref):
    """Fused (x @ W1^T + b1) @ W2^T.

    Grid = (2, num_vocab_tiles):
      phase 0: h[B, E] += x[:, tile] @ W1^T[tile, :]   (h lives in f32 VMEM scratch)
               (last tile also snapshots h -> bf16 scratch hb)
      phase 1: out[:, tile] = hb @ W2^T[:, tile]
    """
    p = pl.program_id(0)        # phase
    t = pl.program_id(1)        # vocab tile
    nt = pl.num_programs(1)

    @pl.when(jnp.logical_and(p == 0, t == 0))
    def _init():
        # Seed the hidden accumulator with the bias (broadcast over batch rows).
        h_ref[...] = jnp.broadcast_to(b1_ref[...], h_ref.shape).astype(jnp.float32)

    @pl.when(p == 0)
    def _accumulate_hidden():
        # x tile [B, T] (f32 -> bf16) @ W1^T tile [T, E] (bf16) -> f32 accumulate.
        h_ref[...] += jnp.dot(
            x_ref[...].astype(jnp.bfloat16),
            w1t_ref[...],
            preferred_element_type=jnp.float32,
        )

    @pl.when(jnp.logical_and(p == 0, t == nt - 1))
    def _finalize_hidden():
        # Cast the hidden activation to bf16 once (reused by every phase-1 tile).
        hb_ref[...] = h_ref[...].astype(jnp.bfloat16)

    @pl.when(p == 1)
    def _project_vocab():
        # h [B, E] (bf16) @ W2^T tile [E, T] (bf16) -> f32 logits tile.
        out_ref[...] = jnp.dot(
            hb_ref[...],
            w2t_ref[...],
            preferred_element_type=jnp.float32,
        )


def prepare_params(w1, b1, w2, *, tile=512):
    """One-time parameter prep (done at init, NOT per forward call):
    pad to TPU-friendly shapes, transpose once, cast weights to bf16."""
    E, V = w1.shape
    assert b1.shape == (E,) and w2.shape == (V, E)
    assert tile % 128 == 0, "tile must be lane-dense (multiple of 128)"
    e_p = _round_up(E, 128)       # embed dim padded to lane width
    v_p = _round_up(V, tile)      # vocab padded to a whole number of tiles
    return {
        "w1t": _pad_to(w1, (e_p, v_p)).T.astype(jnp.bfloat16),      # [V_p, E_p]
        "b1": _pad_to(b1.reshape(1, E), (1, e_p)).astype(jnp.float32),
        "w2t": _pad_to(w2, (v_p, e_p)).T.astype(jnp.bfloat16),      # [E_p, V_p]
        "vocab_size": V,
        "embed_size": E,
        "tile": tile,
    }


def word2vec_forward(x, params):
    """x: [B, V] float32  ->  logits [B, V] float32."""
    w1t, b1p, w2t = params["w1t"], params["b1"], params["w2t"]
    V = params["vocab_size"]
    tile = params["tile"]
    v_p, e_p = w1t.shape

    B = x.shape[0]
    assert x.shape[1] == V
    # Pad batch to the f32 sublane multiple.  (For throughput, callers should batch
    # up to B >= 128 so the MXU M dimension is better utilized; the kernel is
    # weight-streaming / HBM-bound so correctness only needs a multiple of 8.)
    b_p = _round_up(max(B, 8), 8)
    xp = _pad_to(x.astype(jnp.float32), (b_p, v_p))

    nt = v_p // tile
    last = nt - 1

    grid_spec = pl.GridSpec(
        grid=(2, nt),
        in_specs=[
            # x [B_p, V_p]: stream vocab tiles in phase 0; park on the last tile in
            # phase 1 (index unchanged -> no extra DMA).
            pl.BlockSpec((b_p, tile), lambda p, t: (0, t * (1 - p) + last * p)),
            # W1^T [V_p, E_p]: same schedule as x.
            pl.BlockSpec((tile, e_p), lambda p, t: (t * (1 - p) + last * p, 0)),
            # b1 [1, E_p]: resident.
            pl.BlockSpec((1, e_p), lambda p, t: (0, 0)),
            # W2^T [E_p, V_p]: parked on tile 0 during phase 0, streamed in phase 1.
            pl.BlockSpec((e_p, tile), lambda p, t: (0, t * p)),
        ],
        # Output [B_p, V_p]: parked (never written) in phase 0, streamed in phase 1.
        out_specs=pl.BlockSpec((b_p, tile), lambda p, t: (0, t * p)),
        scratch_shapes=[
            pltpu.VMEM((b_p, e_p), jnp.float32),    # hidden f32 accumulator
            pltpu.VMEM((b_p, e_p), jnp.bfloat16),   # hidden bf16 snapshot (phase 1)
        ],
    )

    bytes_accessed = (
        xp.size * 4           # x (f32)
        + w1t.size * 2        # W1^T (bf16)
        + w2t.size * 2        # W2^T (bf16)
        + b1p.size * 4        # bias
        + b_p * v_p * 4       # output (f32)
    )
    cost = pl.CostEstimate(
        flops=4 * b_p * v_p * e_p,   # two matmuls, 2*M*N*K each
        transcendentals=0,
        bytes_accessed=bytes_accessed,
    )

    out = pl.pallas_call(
        w2v_kernel,
        out_shape=jax.ShapeDtypeStruct((b_p, v_p), jnp.float32),
        grid_spec=grid_spec,
        compiler_params=pltpu.CompilerParams(
            # Phase 1 reads per-core VMEM scratch written in phase 0, so both
            # axes must execute sequentially on the same core.
            dimension_semantics=("arbitrary", "arbitrary"),
            vmem_limit_bytes=32 * 1024 * 1024,
        ),
        cost_estimate=cost,
    )(xp, w1t, b1p, w2t)

    return out[:B, :V]


if __name__ == "__main__":
    # Small shapes consistent with the module: embed_size = 100 (as in the spec),
    # a modest vocab, and a small batch of bag-of-words style inputs.  Dims are
    # deliberately NOT multiples of 128/512 to exercise the padding path.
    batch = 8
    vocab_size = 1000
    embed_size = 100

    key = jax.random.PRNGKey(0)
    kx, kw1, kb1, kw2 = jax.random.split(key, 4)

    x = jax.random.normal(kx, (batch, vocab_size), dtype=jnp.float32)
    w1 = jax.random.uniform(kw1, (embed_size, vocab_size), jnp.float32,
                            minval=-0.05, maxval=0.05)
    b1 = jax.random.uniform(kb1, (embed_size,), jnp.float32,
                            minval=-0.05, maxval=0.05)
    w2 = jax.random.uniform(kw2, (vocab_size, embed_size), jnp.float32,
                            minval=-0.05, maxval=0.05)

    params = prepare_params(w1, b1, w2, tile=512)
    out = word2vec_forward(x, params)
    jax.block_until_ready(out)
    assert out.shape == (batch, vocab_size)

    # Reference 1: emulate the kernel's bf16 weight/activation quantization exactly
    # (f32 accumulation) -> tight tolerance.
    hi = jax.lax.Precision.HIGHEST
    q = lambda a: a.astype(jnp.bfloat16).astype(jnp.float32)
    h_q = jnp.dot(q(x), q(w1).T, precision=hi) + b1
    ref_q = jnp.dot(q(h_q), q(w2).T, precision=hi)
    assert jnp.allclose(out, ref_q, atol=5e-3, rtol=5e-3), \
        float(jnp.max(jnp.abs(out - ref_q)))

    # Reference 2: full-f32 math of the original PyTorch module -> loose tolerance
    # (bf16 weight quantization error only).
    ref_f32 = jnp.dot(jnp.dot(x, w1.T, precision=hi) + b1, w2.T, precision=hi)
    assert jnp.allclose(out, ref_f32, atol=3e-2, rtol=3e-2), \
        float(jnp.max(jnp.abs(out - ref_f32)))

    print("KERNEL_OK")
</pallas_src>

<mosaic_0001>
module attributes {stable_mosaic.version = 11 : i64} {
  func.func @w2v_kernel(%arg0: i32, %arg1: i32, %arg2: memref<8x512xf32, #tpu.memory_space<vmem>>, %arg3: memref<512x128xbf16, #tpu.memory_space<vmem>>, %arg4: memref<1x128xf32, #tpu.memory_space<vmem>>, %arg5: memref<128x512xbf16, #tpu.memory_space<vmem>>, %arg6: memref<8x512xf32, #tpu.memory_space<vmem>>, %arg7: memref<8x128xf32, #tpu.memory_space<vmem>>, %arg8: memref<8x128xbf16, #tpu.memory_space<vmem>>) attributes {dimension_semantics = [#tpu.dimension_semantics<arbitrary>, #tpu.dimension_semantics<arbitrary>], iteration_bounds = array<i64: 2, 2>, scalar_prefetch = 0 : i64, scratch_operands = 2 : i64, tpu.core_type = #tpu.core_type<tc>, window_params = [{transform_indices = @transform_0, window_bounds = array<i64: 8, 512>}, {transform_indices = @transform_1, window_bounds = array<i64: 512, 128>}, {pipeline_mode = #tpu.pipeline_mode<synchronous>, transform_indices = @transform_2, window_bounds = array<i64: 1, 128>}, {transform_indices = @transform_3, window_bounds = array<i64: 128, 512>}, {transform_indices = @transform_4, window_bounds = array<i64: 8, 512>}]} {
    %c0_i32 = arith.constant 0 : i32
    %0 = arith.cmpi eq, %arg0, %c0_i32 : i32
    %c0_i32_0 = arith.constant 0 : i32
    %1 = arith.cmpi eq, %arg1, %c0_i32_0 : i32
    %2 = arith.andi %0, %1 : i1
    %3 = arith.extui %2 : i1 to i32
    %c0_i32_1 = arith.constant 0 : i32
    %4 = arith.cmpi ne, %3, %c0_i32_1 : i32
    scf.if %4 {
      %c0 = arith.constant 0 : index
      %c0_8 = arith.constant 0 : index
      %16 = vector.load %arg4[%c0, %c0_8] : memref<1x128xf32, #tpu.memory_space<vmem>>, vector<1x128xf32>
      %17 = vector.shape_cast %16 : vector<1x128xf32> to vector<1x128xf32>
      %18 = vector.broadcast %17 : vector<1x128xf32> to vector<8x128xf32>
      %c0_9 = arith.constant 0 : index
      %c0_10 = arith.constant 0 : index
      %19 = vector.load %arg7[%c0_9, %c0_10] : memref<8x128xf32, #tpu.memory_space<vmem>>, vector<8x128xf32>
      tpu.vector_store %arg7[%c0_9, %c0_10], %18 {strides = array<i32>} : memref<8x128xf32, #tpu.memory_space<vmem>>, vector<8x128xf32>,
    } else {
    }
    %c0_i32_2 = arith.constant 0 : i32
    %5 = arith.cmpi eq, %arg0, %c0_i32_2 : i32
    %6 = arith.extui %5 : i1 to i32
    %c0_i32_3 = arith.constant 0 : i32
    %7 = arith.cmpi ne, %6, %c0_i32_3 : i32
    scf.if %7 {
      %c0 = arith.constant 0 : index
      %c0_8 = arith.constant 0 : index
      %16 = vector.load %arg7[%c0, %c0_8] : memref<8x128xf32, #tpu.memory_space<vmem>>, vector<8x128xf32>
      %c0_9 = arith.constant 0 : index
      %c0_10 = arith.constant 0 : index
      %17 = vector.load %arg2[%c0_9, %c0_10] : memref<8x512xf32, #tpu.memory_space<vmem>>, vector<8x512xf32>
      %18 = arith.truncf %17 : vector<8x512xf32> to vector<8x512xbf16>
      %c0_11 = arith.constant 0 : index
      %c0_12 = arith.constant 0 : index
      %19 = vector.load %arg3[%c0_11, %c0_12] : memref<512x128xbf16, #tpu.memory_space<vmem>>, vector<512x128xbf16>
      %cst = arith.constant dense<0.000000e+00> : vector<8x128xf32>
      %20 = tpu.matmul %18, %19, %cst {dimension_numbers = #tpu.dot_dimension_numbers<[1], [0], [0], [1], [0, 0, 1, 1], [], []>} : vector<8x512xbf16>, vector<512x128xbf16>, vector<8x128xf32> -> vector<8x128xf32>
      %21 = arith.addf %16, %20 : vector<8x128xf32>
      %c0_13 = arith.constant 0 : index
      %c0_14 = arith.constant 0 : index
      %22 = vector.load %arg7[%c0_13, %c0_14] : memref<8x128xf32, #tpu.memory_space<vmem>>, vector<8x128xf32>
      tpu.vector_store %arg7[%c0_13, %c0_14], %21 {strides = array<i32>} : memref<8x128xf32, #tpu.memory_space<vmem>>, vector<8x128xf32>,
    } else {
    }
    %c0_i32_4 = arith.constant 0 : i32
    %8 = arith.cmpi eq, %arg0, %c0_i32_4 : i32
    %c1_i32 = arith.constant 1 : i32
    %9 = arith.cmpi eq, %arg1, %c1_i32 : i32
    %10 = arith.andi %8, %9 : i1
    %11 = arith.extui %10 : i1 to i32
    %c0_i32_5 = arith.constant 0 : i32
    %12 = arith.cmpi ne, %11, %c0_i32_5 : i32
    scf.if %12 {
      %c0 = arith.constant 0 : index
      %c0_8 = arith.constant 0 : index
      %16 = vector.load %arg7[%c0, %c0_8] : memref<8x128xf32, #tpu.memory_space<vmem>>, vector<8x128xf32>
      %17 = arith.truncf %16 : vector<8x128xf32> to vector<8x128xbf16>
      %c0_9 = arith.constant 0 : index
      %c0_10 = arith.constant 0 : index
      %18 = vector.load %arg8[%c0_9, %c0_10] : memref<8x128xbf16, #tpu.memory_space<vmem>>, vector<8x128xbf16>
      tpu.vector_store %arg8[%c0_9, %c0_10], %17 {strides = array<i32>} : memref<8x128xbf16, #tpu.memory_space<vmem>>, vector<8x128xbf16>,
    } else {
    }
    %c1_i32_6 = arith.constant 1 : i32
    %13 = arith.cmpi eq, %arg0, %c1_i32_6 : i32
    %14 = arith.extui %13 : i1 to i32
    %c0_i32_7 = arith.constant 0 : i32
    %15 = arith.cmpi ne, %14, %c0_i32_7 : i32
    scf.if %15 {
      %c0 = arith.constant 0 : index
      %c0_8 = arith.constant 0 : index
      %16 = vector.load %arg8[%c0, %c0_8] : memref<8x128xbf16, #tpu.memory_space<vmem>>, vector<8x128xbf16>
      %c0_9 = arith.constant 0 : index
      %c0_10 = arith.constant 0 : index
      %17 = vector.load %arg5[%c0_9, %c0_10] : memref<128x512xbf16, #tpu.memory_space<vmem>>, vector<128x512xbf16>
      %cst = arith.constant dense<0.000000e+00> : vector<8x512xf32>
      %18 = tpu.matmul %16, %17, %cst {dimension_numbers = #tpu.dot_dimension_numbers<[1], [0], [0], [1], [0, 0, 1, 1], [], []>} : vector<8x128xbf16>, vector<128x512xbf16>, vector<8x512xf32> -> vector<8x512xf32>
      %c0_11 = arith.constant 0 : index
      %c0_12 = arith.constant 0 : index
      %19 = vector.load %arg6[%c0_11, %c0_12] : memref<8x512xf32, #tpu.memory_space<vmem>>, vector<8x512xf32>
      tpu.vector_store %arg6[%c0_11, %c0_12], %18 {strides = array<i32>} : memref<8x512xf32, #tpu.memory_space<vmem>>, vector<8x512xf32>,
    } else {
    }
    return
  }
  func.func @transform_0(%arg0: i32, %arg1: i32) -> (i32, i32) {
    %c1_i32 = arith.constant 1 : i32
    %0 = arith.subi %c1_i32, %arg0 : i32
    %1 = arith.muli %arg1, %0 : i32
    %c1_i32_0 = arith.constant 1 : i32
    %2 = arith.muli %c1_i32_0, %arg0 : i32
    %3 = arith.addi %1, %2 : i32
    %c0_i32 = arith.constant 0 : i32
    %c0_i32_1 = arith.constant 0 : i32
    return %c0_i32, %3 : i32, i32
  }
  func.func @transform_1(%arg0: i32, %arg1: i32) -> (i32, i32) {
    %c1_i32 = arith.constant 1 : i32
    %0 = arith.subi %c1_i32, %arg0 : i32
    %1 = arith.muli %arg1, %0 : i32
    %c1_i32_0 = arith.constant 1 : i32
    %2 = arith.muli %c1_i32_0, %arg0 : i32
    %3 = arith.addi %1, %2 : i32
    %c0_i32 = arith.constant 0 : i32
    %c0_i32_1 = arith.constant 0 : i32
    return %3, %c0_i32 : i32, i32
  }
  func.func @transform_2(%arg0: i32, %arg1: i32) -> (i32, i32) {
    %c0_i32 = arith.constant 0 : i32
    %c0_i32_0 = arith.constant 0 : i32
    %c0_i32_1 = arith.constant 0 : i32
    return %c0_i32, %c0_i32_0 : i32, i32
  }
  func.func @transform_3(%arg0: i32, %arg1: i32) -> (i32, i32) {
    %0 = arith.muli %arg1, %arg0 : i32
    %c0_i32 = arith.constant 0 : i32
    %c0_i32_0 = arith.constant 0 : i32
    return %c0_i32, %0 : i32, i32
  }
  func.func @transform_4(%arg0: i32, %arg1: i32) -> (i32, i32) {
    %0 = arith.muli %arg1, %arg0 : i32
    %c0_i32 = arith.constant 0 : i32
    %c0_i32_0 = arith.constant 0 : i32
    return %c0_i32, %0 : i32, i32
  }
}

</mosaic_0001>

<bundles_post_ra>
// kernel: tpu_custom_call.1
= control target key start
LH: loop header
LB: loop body
LE: loop exit
PB: predicated region body
PF: predicated region fallthrough
CT: control target
= control target key end

     0   :  { %s2161_s0 = inlined_call_operand.hbm [shape: f32[8,1024], index: 0, kind: input, shape index: {}]   ;;  %s2162_s1 = inlined_call_operand.hbm [shape: bf16[1024,128], index: 1, kind: input, shape index: {}]   ;;  %s2163_s2 = inlined_call_operand.vmem [shape: f32[1,128], index: 2, kind: input, shape index: {}]   ;;  %s2164_s3 = inlined_call_operand.hbm [shape: bf16[128,1024], index: 3, kind: input, shape index: {}]   ;;  %s2165_s4 = inlined_call_operand.hbm [shape: f32[8,1024], index: 4, kind: output, shape index: {}]  }
   0x1   :  { %2176 = sst [smem:[#allocation21_spill]] %s2162_s1 }
   0x2   :  { %9 = vsyncpa [#allocation5], 0 }
   0x3   :  { %11 = vsyncpa [#allocation5 + $0x1], 0 }
   0x4   :  { %12 = vsyncpa [#allocation8], 0 }
   0x5   :  { %14 = vsyncpa [#allocation8 + $0x1], 0 }
   0x6   :  { %15 = vsyncpa [#allocation6], 0 }
   0x7   :  { %17 = vsyncpa [#allocation6 + $0x1], 0  ;;  %s1729_s15 = smov 0   ;;  %s1731_s16 = smov 0  }
   0x8   :  { %s1733_s17 = smov 0   ;;  %s1735_s18 = smov 0  }
   0x9   :  { %s1737_s19 = smov 0   ;;  %s1739_s20 = smov 0  }
   0xa   :  { %s1741_s21 = smov 0   ;;  %s1743_s22 = smov 0  }
   0xb   :  { %s1745_s23 = smov 0   ;;  %s1747_s24 = smov 0  }
   0xc   :  { %s1749_s25 = smov 0  }
   0xd LB: > { %2177 = sst [smem:[#allocation15_spill]] %s1672_s20  ;;  %s1783_s26 = sadd.s32 4294967295, %s1692_s25   ;;  %s1692_s25 = sphi %s1749_s25, %s23_s25   ;;  %s1688_s24 = sphi %s1747_s24, %s2206_s24   ;;  %s1684_s23 = sphi %s1745_s23, %s2205_s23   ;;  %s1680_s22 = sphi %s1743_s22, %s2204_s22   ;;  %s1676_s21 = sphi %s1741_s21, %s2203_s21   ;;  %s1672_s20 = sphi %s1739_s20, %s2202_s20   ;;  %s1668_s19 = sphi %s1737_s19, %s2211_s19   ;;  %s1664_s18 = sphi %s1735_s18, %s2210_s18   ;;  %s1660_s17 = sphi %s1733_s17, %s2209_s17   ;;  %s1656_s16 = sphi %s1731_s16, %s2208_s16   ;;  %s1652_s15 = sphi %s1729_s15, %s2207_s15  }
   0xe   : > { %2178 = sst [smem:[#allocation16_spill]] %s1684_s23  ;;  %s32_s27 = sadd.s32 1, %s1684_s23 }
   0xf   : > { %2179 = sst [smem:[#allocation17_spill]] %s1688_s24  ;;  %p33_p0 = scmp.ge.s32.totalorder %s32_s27, 2 }
  0x10   : > { %s35_s28 = sadd.s32 1, %s1688_s24  ;;  %s39_s29 = ssub.s32 1, %s1688_s24 }
  0x11   : > { %s48_s30 = sadd.s32 1, %s1672_s20  ;;  %s2213_s27 = smov (%p33_p0, %s32_s27), 0 }
  0x12   : > { %2180 = sst [smem:[#allocation18_spill]] %s2213_s27  ;;  %s2215_s28 = smov (!%p33_p0, %s35_s28), %s1688_s24 }
  0x13   : > { %s40_s5 = smul.u32 %s1684_s23, %s39_s29  ;;  %p55_p1 = scmp.ne.s32.totalorder %s1672_s20, %s1668_s19 }
  0x14   : > { %p37_p2 = scmp.ge.s32.totalorder %s2215_s28, 2  ;;  %p2172_p3 = scmp.eq.s32.totalorder %s1692_s25, 0 }
  0x15   : > { %s1797_s6 = sadd.s32 %s1688_s24, %s40_s5  ;;  %p61_p4 = scmp.ne.s32.totalorder %s1668_s19, %s1664_s18 }
  0x16   : > { %s2217_s28 = smov (%p37_p2, %s2215_s28), 0  ;;  %p1804_p5 = por %p2172_p3, %p55_p1 }
  0x17   : > { %2181 = sst [smem:[#allocation19_spill]] %s2217_s28  ;;  %p2171_p6 = scmp.eq.s32.totalorder %s1783_s26, 0 }
  0x18   : > { %s42_s8 = ssub.s32 1, %s2217_s28  ;;  %s1812_s9 = smul.u32 %s1684_s23, %s1688_s24 }
  0x19   : > { %s43_s10 = smul.u32 %s42_s8, %s2213_s27  ;;  %p1817_p7 = por %p2171_p6, %p61_p4 }
  0x1a   : > { %s125_s12 = smul.u32 %s2217_s28, %s2213_s27  ;;  %p2170_p11 = scmp.lt.s32.totalorder %s1692_s25, 4 }
  0x1b   : > { %s2183_s11 = scalar_select %p1817_p7, 1, 0 }
  0x1c   : > { %s44_s13 = sadd.s32 %s43_s10, %s2217_s28  ;;  %s1827_s18 = ssub.s32 %s1812_s9, %s125_s12 }
  0x1d   : > { %s45_s14 = ssub.s32 %s1797_s6, %s44_s13  ;;  %s1832_s29 = sand.u32 1, %s1672_s20  }
  0x1e   : > { %p46_p9 = scmp.eq.s32.totalorder %s45_s14, 0  ;;  %p1841_p12 = pnand %p2170_p11, %p1804_p5 }
  0x1f   : > { %s219_s10 = sand.u32 1, %s1692_s25   ;;  %s1143_s12 = sshll.u32 %s1832_s29, 8 }
  0x20   : > { %s1835_s5 = scalar_select %p46_p9, %s1672_s20, %s48_s30  }
  0x21   : > { %s1227_s13 = sshll.u32 %s1797_s6, 12  ;;  %s223_s28 = scalar_lea.vmem [#allocation7], %s1143_s12 }
  0x22   : > { %2184 = sst [smem:[#allocation20_spill]] %s1835_s5  ;;  %s233_s14 = sshll.u32 %s223_s28, 4  ;;  %s1853_s14 = int_to_ptr.vmem [resolvable:$true] %s233_s14 }
  0x23   : > { %s2186_s1 = sld [smem:[#allocation21_spill]]  ;;  %s1855_s30 = scalar_lea.sflag [#allocation8], %s219_s10 }
  0x24   : > { %p1474_p0 = pneg %p1841_p12 }
  0x29   : > { %s1851_s23 = scalar_lea.hbm %s2186_s1, %s1227_s13  ;;  %s1477_s27 = scalar_lea.hbm %s2186_s1, 8192 }
  0x2a   : > { %s1472_s7 = scalar_lea.hbm %s1851_s23, 4096  ;;  %p1478_p4 = scmp.lt.u32.totalorder %s1851_s23, %s2186_s1 }
  0x2b   : > { %p1473_p13 = scmp.ne.s32.totalorder %s1851_s23, %s1472_s7  ;;  %p1479_p5 = scmp.lt.u32.totalorder %s1477_s27, %s1472_s7 }
  0x2c   : > { %p1481_p11 = scmp.lt.u32.totalorder %s1472_s7, %s1851_s23 }
  0x2d   : > { %p1475_p1 = pnand %p1474_p0, %p1473_p13  ;;  %p1480_p9 = por %p1479_p5, %p1478_p4 }
  0x2f   : > { %p1476_p2 = pneg %p1475_p1  ;;  %p1482_p8 = por %p1481_p11, %p1480_p9 }
  0x31   : > { %p1483_p6 = pnand %p1482_p8, %p1476_p2 }
  0x33   : > { %1486 = shalt.err (!%p1483_p6)
}
  0x34   : > { %s1487_s10 = scalar_lea.vmem %s1853_s14, 4096  ;;  %s1694_s28 = smov [#allocation7]  }
  0x35   : > { %p1488_p13 = scmp.ne.s32.totalorder %s1853_s14, %s1487_s10  ;;  %s1492_s24 = sshll.u32 %s1694_s28, 4  ;;  %s1493_s24 = int_to_ptr.vmem [resolvable:$false] %s1492_s24 }
  0x36   : > { %s1494_s12 = scalar_lea.vmem %s1493_s24, 8192  ;;  %p1495_p10 = scmp.lt.s32.totalorder %s1853_s14, %s1493_s24 }
  0x37   : > { %p1490_p1 = pnand %p1488_p13, %p1474_p0  ;;  %p1496_p4 = scmp.lt.s32.totalorder %s1494_s12, %s1487_s10 }
  0x39   : > { %p1491_p3 = pneg %p1490_p1  ;;  %p1497_p5 = por %p1496_p4, %p1495_p10 }
  0x3b   : > { %p1498_p11 = pnand %p1497_p5, %p1491_p3 }
  0x3d   : > { %1501 = shalt.err (!%p1498_p11)
}
  0x3e   : > { %s1695_s7 = smov 64   ;;  %s1696_s27 = smov 4  }
  0x3f   : > { %1288 = dma.hbm_to_vmem [thread:$0]  (!%p1841_p12), %s1851_s23, 4096, %s1853_s14, %s1855_s30, %s1695_s7, %s1695_s7, %s1696_s27  }
  0x40   : > { %p1149_p6 = scmp.ge.s32.totalorder %s1692_s25, 1  ;;  %p263_p8 = scmp.lt.s32.totalorder %s1692_s25, 5 }
  0x41   : > { %s1140_s10 = sshll.u32 %s1832_s29, 5  ;;  %s1226_s28 = sshll.u32 %s1797_s6, 9 }
  0x42   : > { %p1885_p2 = pnand %p1149_p6, %p263_p8  ;;  %s1894_s1 = scalar_lea.hbm %s2161_s0, %s1226_s28 }
  0x43   : > { %s201_s5 = scalar_lea.vmem [#allocation4], %s1140_s10  ;;  %s198_s23 = scalar_lea.sflag [#allocation5], %s1832_s29 }
  0x44   : > { %s2187_s13 = scalar_select %p1885_p2, 1, 0 }
  0x45   : > { %s212_s20 = sshll.u32 %s201_s5, 4  ;;  %s1502_s14 = scalar_lea.hbm %s1894_s1, 512  ;;  %s213_s20 = int_to_ptr.vmem [resolvable:$true] %s212_s20 }
  0x46   : > { %p1503_p3 = scmp.ne.s32.totalorder %s1894_s1, %s1502_s14  ;;  %s1507_s27 = scalar_lea.hbm %s2161_s0, 1024 }
  0x47   : > { %p1508_p13 = scmp.lt.u32.totalorder %s1894_s1, %s2161_s0  ;;  %p1509_p1 = scmp.lt.u32.totalorder %s1507_s27, %s1502_s14 }
  0x48   : > { %p1505_p10 = pnand %p1503_p3, %p1474_p0  ;;  %p1511_p5 = scmp.lt.u32.totalorder %s1502_s14, %s1894_s1 }
  0x49   : > { %p1510_p4 = por %p1509_p1, %p1508_p13 }
  0x4a   : > { %p1506_p9 = pneg %p1505_p10 }
  0x4b   : > { %p1512_p11 = por %p1511_p5, %p1510_p4 }
  0x4d   : > { %p1513_p6 = pnand %p1512_p11, %p1506_p9 }
  0x4f   : > { %1516 = shalt.err (!%p1513_p6)
}
  0x50   : > { %s1517_s29 = scalar_lea.vmem %s213_s20, 512  ;;  %s1697_s5 = smov [#allocation4]  }
  0x51   : > { %p1518_p8 = scmp.ne.s32.totalorder %s213_s20, %s1517_s29  ;;  %s1522_s10 = sshll.u32 %s1697_s5, 4  ;;  %s1523_s10 = int_to_ptr.vmem [resolvable:$false] %s1522_s10 }
  0x52   : > { %s1524_s12 = scalar_lea.vmem %s1523_s10, 1024  ;;  %p1525_p7 = scmp.lt.s32.totalorder %s213_s20, %s1523_s10 }
  0x53   : > { %p1520_p3 = pnand %p1518_p8, %p1474_p0  ;;  %p1526_p2 = scmp.lt.s32.totalorder %s1524_s12, %s1517_s29 }
  0x55   : > { %p1521_p10 = pneg %p1520_p3  ;;  %p1527_p1 = por %p1526_p2, %p1525_p7 }
  0x57   : > { %p1528_p13 = pnand %p1527_p1, %p1521_p10 }
  0x59   : > { %1531 = shalt.err (!%p1528_p13)
}
  0x5a   : > { %1285 = dma.hbm_to_vmem [thread:$0]  (!%p1841_p12), %s1894_s1, 512, %s213_s20, %s198_s23  }
  0x5b   : > { %s1137_s14 = sadd.s32 4294967294, %s1692_s25   ;;  %s129_s6 = sadd.s32 1, %s1660_s17 }
  0x5c   : > { %p2188_p7 = scmp.eq.s32.totalorder %s1827_s18, 0  ;;  %p136_p0 = scmp.ne.s32.totalorder %s1660_s17, %s1656_s16 }
  0x5d   : > { %p142_p2 = scmp.ne.s32.totalorder %s1656_s16, %s1652_s15  ;;  %p174_p9 = scmp.eq.s32.totalorder %s1137_s14, 3 }
  0x5e   : > { %s1921_s8 = scalar_select %p2188_p7, %s1660_s17, %s129_s6  }
  0x5f   : > { %s245_s7 = sand.u32 1, %s1660_s17   ;;  %p2189_p4 = scmp.eq.s32.totalorder %s1692_s25, 0 }
  0x60   : > { %p2190_p11 = scmp.eq.s32.totalorder %s1783_s26, 0  ;;  %p2192_p8 = scmp.eq.s32.totalorder %s1783_s26, 3 }
  0x61   : > { %p138_p5 = por %p136_p0, %p2189_p4  ;;  %p1942_p12 = por %p174_p9, %p142_p2 }
  0x62   : > { %p1932_p6 = por %p142_p2, %p2190_p11  ;;  %p1938_p3 = por %p2192_p8, %p136_p0 }
  0x63   : > { %s2194_s20 = scalar_select %p1942_p12, 1, 0 }
  0x64   : > { %s2193_s1 = scalar_select %p1938_p3, 1, 0 }
  0x65   : > { %s1146_s18 = sshll.u32 %s245_s7, 8  ;;  %s1228_s23 = sshll.u32 %s1812_s9, 8 }
  0x66   : > { %s1950_s29 = scalar_lea.hbm %s2164_s3, %s1228_s23  ;;  %s247_s5 = scalar_lea.vmem [#allocation9], %s1146_s18 }
  0x67   : > { %s255_s10 = sshll.u32 %s247_s5, 4  ;;  %p2195_p10 = scmp.lt.s32.totalorder %s1692_s25, 4  ;;  %s1958_s10 = int_to_ptr.vmem [resolvable:$true] %s255_s10 }
  0x68   : > { %s1532_s9 = scalar_lea.hbm %s1950_s29, 4096  ;;  %s1537_s7 = scalar_lea.hbm %s2164_s3, 8192 }
  0x69   : > { %p1954_p1 = pnand %p2195_p10, %p138_p5  ;;  %p1533_p13 = scmp.ne.s32.totalorder %s1950_s29, %s1532_s9 }
  0x6a   : > { %p1538_p9 = scmp.lt.u32.totalorder %s1950_s29, %s2164_s3  ;;  %p1539_p4 = scmp.lt.u32.totalorder %s1537_s7, %s1532_s9 }
  0x6b   : > { %p1534_p7 = pneg %p1954_p1  ;;  %p1541_p11 = scmp.lt.u32.totalorder %s1532_s9, %s1950_s29 }
  0x6c   : > { %p1540_p5 = por %p1539_p4, %p1538_p9 }
  0x6d   : > { %p1535_p0 = pnand %p1534_p7, %p1533_p13 }
  0x6e   : > { %p1542_p8 = por %p1541_p11, %p1540_p5 }
  0x6f   : > { %p1536_p2 = pneg %p1535_p0 }
  0x71   : > { %p1543_p10 = pnand %p1542_p8, %p1536_p2 }
  0x73   : > { %1546 = shalt.err (!%p1543_p10)
}
  0x74   : > { %s1547_s28 = scalar_lea.vmem %s1958_s10, 4096  ;;  %s1698_s24 = smov [#allocation9]  }
  0x75   : > { %p1548_p13 = scmp.ne.s32.totalorder %s1958_s10, %s1547_s28  ;;  %s1552_s5 = sshll.u32 %s1698_s24, 4  ;;  %s1553_s5 = int_to_ptr.vmem [resolvable:$false] %s1552_s5 }
  0x76   : > { %s1554_s14 = scalar_lea.vmem %s1553_s5, 8192  ;;  %p1555_p3 = scmp.lt.s32.totalorder %s1958_s10, %s1553_s5 }
  0x77   : > { %p1550_p0 = pnand %p1548_p13, %p1534_p7  ;;  %p1556_p9 = scmp.lt.s32.totalorder %s1554_s14, %s1547_s28 }
  0x79   : > { %p1551_p12 = pneg %p1550_p0  ;;  %p1557_p4 = por %p1556_p9, %p1555_p3 }
  0x7b   : > { %p1558_p5 = pnand %p1557_p4, %p1551_p12 }
  0x7d   : > { %1561 = shalt.err (!%p1558_p5)
}
  0x7e   : > { %s1699_s9 = smov 512   ;;  %s1700_s6 = smov 256  }
  0x7f   : > { %s1701_s7 = smov 16   ;;  %p2197_p7 = scmp.ne.s32.totalorder %s2187_s13, 0 }
  0x80   : > { %1291 = dma.hbm_to_vmem [thread:$0]  (!%p1954_p1), %s1950_s29, 4096, %s1958_s10, %s1855_s30, %s1699_s9, %s1700_s6, %s1701_s7  }
  0x81   : > { %267 = sbr.rel (%p2197_p7) target bundleno = 699 (0x2bb), region = 36  ;;  %s269_s18 = sand.u32 (!%p2197_p7), 1, %s1668_s19  }
  0x82   : > { %s1150_s23 = sshll.u32 (!%p2197_p7), %s269_s18, 5  ;;  %s270_s28 = scalar_lea.sflag (!%p2197_p7), [#allocation5], %s269_s18 }
  0x83   : > { %s1989_s24 = scalar_lea.vmem (!%p2197_p7), [#allocation4], %s1150_s23  ;;  %p2198_p3 = scmp.ne.s32.totalorder (!%p2197_p7), %s2183_s11, 0 }
  0x88   : > { %1635 = dma.done.wait (%p2198_p3), %s270_s28, 512  }
  0x89   : > { %1637 = vsyncadd (%p2198_p3), %s270_s28, 4294966784  ;;  %s278_s5 = sand.u32 1, %s1783_s26   ;;  %s1151_s12 = sshll.u32 %s269_s18, 8 }
  0x8a   : > { %s279_s30 = scalar_lea.sflag [#allocation8], %s278_s5  ;;  %s1996_s29 = scalar_lea.vmem [#allocation7], %s1151_s12 }
  0x8b   : > { %1639 = dma.done.wait (%p2198_p3), %s279_s30, 4096  }
  0x8c   : > { %1641 = vsyncadd (%p2198_p3), %s279_s30, 4294963200  ;;  %s2003_s13 = sand.u32 1, %s1656_s16  }
  0x8d   : > { %s1152_s10 = sshll.u32 %s2003_s13, 8 }
  0x8e   : > { %s2006_s14 = scalar_lea.vmem [#allocation9], %s1152_s10 }
  0x8f   : > { %1643 = dma.done.wait (%p1932_p6), %s279_s30, 4096  }
  0x90   : > { %1645 = vsyncadd (%p1932_p6), %s279_s30, 4294963200  ;;  %s1153_s26 = sshll.u32 %s2003_s13, 5  ;;  %p339_p12 = scmp.eq.s32.totalorder %s1680_s22, 0 }
  0x91   : > { %p340_p1 = scmp.eq.s32.totalorder %s1676_s21, 0  ;;  %s2017_s11 = scalar_lea.vmem [#allocation10], %s1153_s26 }
  0x93   : > { %p341_p2 = pnand %p340_p1, %p339_p12 }
  0x94   : > { %v1154_v0 = vld [vmem:[%s2163_s2] ss:$0 sm:$0xff] (!%p341_p2) }
  0x95   : > { %344 = sbr.rel (%p341_p2) target bundleno = 156 (0x9c), region = 52  ;;  %352 = vst [vmem:[#allocation2] sm:$0xff] (!%p341_p2), %v1154_v0 }
  0x9c PF: > { %p1155_p6 = scmp.ne.s32.totalorder %s1680_s22, 0 }
  0x9d   : > { %v1392_v1 = vld [vmem:[%s1996_s29 + $0x40] sm:$0xff] (!%p1155_p6)   ;;  %v1396_v5 = vld [vmem:[%s1996_s29 + $0x48] sm:$0xff] (!%p1155_p6)   ;;  %v1400_v9 = vld [vmem:[%s1996_s29 + $0x50] sm:$0xff] (!%p1155_p6)  }
  0x9e   : > { %355 = sbr.rel (%p1155_p6) target bundleno = 412 (0x19c), region = 56  ;;  %v1393_v2 = vld [vmem:[%s1996_s29 + $0xc0] sm:$0xff] (!%p1155_p6)   ;;  %1230 = vmatprep.subr.bf16.mxu0 (!%p1155_p6), %v1392_v1  ;;  %v1397_v6 = vld [vmem:[%s1996_s29 + $0xc8] sm:$0xff] (!%p1155_p6)   ;;  %v1401_v10 = vld [vmem:[%s1996_s29 + $0xd0] sm:$0xff] (!%p1155_p6)  }
  0x9f   : > { %v1394_v3 = vld [vmem:[%s1996_s29] sm:$0xff] (!%p1155_p6)   ;;  %1252 = vmatprep.subr.bf16.mxu1 (!%p1155_p6), %v1393_v2  ;;  %v1398_v7 = vld [vmem:[%s1996_s29 + $0x8] sm:$0xff] (!%p1155_p6)   ;;  %v1402_v11 = vld [vmem:[%s1996_s29 + $0x10] sm:$0xff] (!%p1155_p6)  }
  0xa0   : > { %v1395_v4 = vld [vmem:[%s1996_s29 + $0x80] sm:$0xff] (!%p1155_p6)   ;;  %1231 = vmatpush3.bf16.msra.mxu0 (!%p1155_p6), %v1394_v3  ;;  %v1399_v8 = vld [vmem:[%s1996_s29 + $0x88] sm:$0xff] (!%p1155_p6)   ;;  %v1403_v12 = vld [vmem:[%s1996_s29 + $0x90] sm:$0xff] (!%p1155_p6)  }
  0xa1   : > { %1253 = vmatpush3.bf16.msra.mxu1 (!%p1155_p6), %v1395_v4  ;;  %1232 = vmatprep.subr.bf16.mxu0 (!%p1155_p6), %v1396_v5  ;;  %v1404_v13 = vld [vmem:[%s1996_s29 + $0x58] sm:$0xff] (!%p1155_p6)   ;;  %v1408_v17 = vld [vmem:[%s1996_s29 + $0x60] sm:$0xff] (!%p1155_p6)   ;;  %v1412_v21 = vld [vmem:[%s1996_s29 + $0x68] sm:$0xff] (!%p1155_p6)  }
  0xa2   : > { %1254 = vmatprep.subr.bf16.mxu1 (!%p1155_p6), %v1397_v6  ;;  %v1405_v14 = vld [vmem:[%s1996_s29 + $0xd8] sm:$0xff] (!%p1155_p6)   ;;  %v1409_v18 = vld [vmem:[%s1996_s29 + $0xe0] sm:$0xff] (!%p1155_p6)   ;;  %v1413_v22 = vld [vmem:[%s1996_s29 + $0xe8] sm:$0xff] (!%p1155_p6)  }
  0xa3   : > { %v1406_v15 = vld [vmem:[%s1996_s29 + $0x18] sm:$0xff] (!%p1155_p6)   ;;  %v1410_v19 = vld [vmem:[%s1996_s29 + $0x20] sm:$0xff] (!%p1155_p6)   ;;  %v1414_v23 = vld [vmem:[%s1996_s29 + $0x28] sm:$0xff] (!%p1155_p6)  }
  0xa4   : > { %1233 = vmatpush3.bf16.msra.mxu0 (!%p1155_p6), %v1398_v7  ;;  %v1407_v16 = vld [vmem:[%s1996_s29 + $0x98] sm:$0xff] (!%p1155_p6)   ;;  %v1411_v20 = vld [vmem:[%s1996_s29 + $0xa0] sm:$0xff] (!%p1155_p6)   ;;  %v1415_v24 = vld [vmem:[%s1996_s29 + $0xa8] sm:$0xff] (!%p1155_p6)  }
  0xa5   : > { %1255 = vmatpush3.bf16.msra.mxu1 %v1399_v8  ;;  %1234 = vmatprep.subr.bf16.mxu0 %v1400_v9  ;;  %v1416_v25 = vld [vmem:[%s1996_s29 + $0x70] sm:$0xff]   ;;  %v1420_v29 = vld [vmem:[%s1996_s29 + $0x78] sm:$0xff]   ;;  %v358_v33 = vld [vmem:[%s1989_s24 + $0x8] sm:$0xff] }
  0xa6   : > { %1256 = vmatprep.subr.bf16.mxu1 %v1401_v10  ;;  %v1417_v26 = vld [vmem:[%s1996_s29 + $0xf0] sm:$0xff]   ;;  %v1421_v30 = vld [vmem:[%s1996_s29 + $0xf8] sm:$0xff]   ;;  %v357_v35 = vld [vmem:[%s1989_s24] sm:$0xff]  ;;  %v362_v36 = vpack.c.bf16 %v358_v33, %v358_v33 }
  0xa7   : > { %v1418_v27 = vld [vmem:[%s1996_s29 + $0x30] sm:$0xff]   ;;  %v1422_v31 = vld [vmem:[%s1996_s29 + $0x38] sm:$0xff]   ;;  %v361_v38 = vpack.c.bf16 %v357_v35, %v357_v35 }
  0xa8   : > { %1235 = vmatpush3.bf16.msra.mxu0 %v1402_v11  ;;  %v1419_v28 = vld [vmem:[%s1996_s29 + $0xb0] sm:$0xff]   ;;  %v1423_v32 = vld [vmem:[%s1996_s29 + $0xb8] sm:$0xff]   ;;  %653 = vmatprep.mubr.bf16.mxu0 %v362_v36 }
  0xa9   : > { %1257 = vmatpush3.bf16.msra.mxu1 %v1403_v12  ;;  %1236 = vmatprep.subr.bf16.mxu0 %v1404_v13  ;;  %v360_v34 = vld [vmem:[%s1989_s24 + $0x18] sm:$0xff]  ;;  %v359_v39 = vld [vmem:[%s1989_s24 + $0x10] sm:$0xff] }
  0xaa   : > { %1258 = vmatprep.subr.bf16.mxu1 %v1405_v14  ;;  %v364_v37 = vpack.c.bf16 %v360_v34, %v360_v34  ;;  %v363_v40 = vpack.c.bf16 %v359_v39, %v359_v39  ;;  %v356_v49 = vld [vmem:[#allocation2] sm:$0xff] }
  0xac   : > { %1237 = vmatpush3.bf16.msra.mxu0 %v1406_v15  ;;  %693 = vmatprep.mubr.bf16.mxu1 %v364_v37 }
  0xad   : > { %1259 = vmatpush3.bf16.msra.mxu1 %v1407_v16  ;;  %1238 = vmatprep.subr.bf16.mxu0 %v1408_v17 }
  0xae   : > { %1260 = vmatprep.subr.bf16.mxu1 %v1409_v18 }
  0xb0   : > { %1239 = vmatpush3.bf16.msra.mxu0 %v1410_v19 }
  0xb1   : > { %1261 = vmatpush3.bf16.msra.mxu1 %v1411_v20  ;;  %1240 = vmatprep.subr.bf16.mxu0 %v1412_v21 }
  0xb2   : > { %1262 = vmatprep.subr.bf16.mxu1 %v1413_v22 }
  0xb4   : > { %1241 = vmatpush3.bf16.msra.mxu0 %v1414_v23 }
  0xb5   : > { %1263 = vmatpush3.bf16.msra.mxu1 %v1415_v24  ;;  %1242 = vmatprep.subr.bf16.mxu0 %v1416_v25 }
  0xb6   : > { %1264 = vmatprep.subr.bf16.mxu1 %v1417_v26 }
  0xb8   : > { %1243 = vmatpush3.bf16.msra.mxu0 %v1418_v27 }
  0xb9   : > { %1265 = vmatpush3.bf16.msra.mxu1 %v1419_v28  ;;  %1244 = vmatprep.subr.bf16.mxu0 %v1420_v29 }
  0xba   : > { %1266 = vmatprep.subr.bf16.mxu1 %v1421_v30 }
  0xbc   : > { %1245 = vmatpush3.bf16.msra.mxu0 %v1422_v31 }
  0xbd   : > { %1267 = vmatpush3.bf16.msra.mxu1 %v1423_v32 }
  0xbf   : > { %654 = vmatmul.mubr.bf16.vlgmr.msra.gmra.mrb[0].mxu0 %v361_v38 }
  0xc0   : > { %694 = vmatmul.mubr.bf16.vlgmr.msra.gmra.mrb[0].mxu1 %v363_v40 }
 0x192   : > { %v1246_v41 = vpop.f32.mrb[0].mxu0 }
 0x193   : > { %v1268_v42 = vpop.f32.mrb[0].mxu1  ;;  %v1247_v43 = vpop.f32.mrb[1].mxu0 }
 0x194   : > { %v1269_v44 = vpop.f32.mrb[1].mxu1  ;;  %v1248_v45 = vadd.f32 %v1247_v43, %v1246_v41  ;;  %v1249_v47 = vpop.f32.mrb[2].mxu0 }
 0x195   : > { %v1270_v46 = vadd.f32 %v1269_v44, %v1268_v42  ;;  %v1271_v48 = vpop.f32.mrb[2].mxu1  ;;  %v1250_v50 = vpop.f32.mrb[3].mxu0 }
 0x196   : > { %v1272_v51 = vpop.f32.mrb[3].mxu1 }
 0x197   : > { %v696_v52 = vadd.f32 %v1270_v46, %v1248_v45 }
 0x199   : > { %v701_v53 = vadd.f32 %v696_v52, %v356_v49 }
 0x19b   : > { %702 = vst [vmem:[#allocation2] sm:$0xff] %v701_v53 }
 0x19c PF: > { %p703_p11 = scmp.eq.s32.totalorder %s1676_s21, 1 }
 0x19e   : > { %p704_p8 = pnand %p703_p11, %p339_p12 }
 0x1a0   : > { %707 = sbr.rel (%p704_p8) target bundleno = 423 (0x1a7), region = 60 }
 0x1a2   : > { %v708_v54 = vld [vmem:[#allocation2] sm:$0xff] (!%p704_p8) }
 0x1a3   : > { %v709_v55 = vpack.c.bf16 (!%p704_p8), %v708_v54, %v708_v54 }
 0x1a5   : > { %710 = vst [vmem:[#allocation3] sm:$0xf] (!%p704_p8), %v709_v55 }
 0x1a7 PF: > { %p1188_p10 = scmp.ne.s32.totalorder %s1680_s22, 1 }
 0x1a8   : > { %v1424_v56 = vld [vmem:[%s2006_s14 + $0x4] ss:$16 sps:$4 sm:$0xff] (!%p1188_p10)   ;;  %v1426_v57 = vld [vmem:[%s2006_s14 + $0xc] ss:$16 sps:$4 sm:$0xff] (!%p1188_p10)   ;;  %v1702_v58 = vmov (!%p1188_p10), 0  }
 0x1a9   : > { %714 = sbr.rel (%p1188_p10) target bundleno = 673 (0x2a1), region = 64  ;;  %940 = vmatprep.mubr.bf16.mxu0 (!%p1188_p10), %v1702_v58  ;;  %981 = vmatprep.mubr.bf16.mxu1 (!%p1188_p10), %v1702_v58  ;;  %v1428_v59 = vld [vmem:[%s2006_s14] ss:$16 sps:$4 sm:$0xff] (!%p1188_p10)   ;;  %v1429_v60 = vld [vmem:[%s2006_s14 + $0x8] ss:$16 sps:$4 sm:$0xff] (!%p1188_p10)  }
 0x1aa   : > { %908 = vmatprep.subr.bf16.mxu0 (!%p1188_p10), %v1424_v56  ;;  %949 = vmatprep.subr.bf16.mxu1 (!%p1188_p10), %v1426_v57  ;;  %v1430_v61 = vld [vmem:[%s2006_s14 + $0x24] ss:$16 sps:$4 sm:$0xff] (!%p1188_p10)   ;;  %v1432_v62 = vld [vmem:[%s2006_s14 + $0x2c] ss:$16 sps:$4 sm:$0xff] (!%p1188_p10)   ;;  %v1434_v63 = vld [vmem:[%s2006_s14 + $0x20] ss:$16 sps:$4 sm:$0xff] (!%p1188_p10)  }
 0x1ab   : > { %909 = vmatpush1.bf16.msra.mxu0 (!%p1188_p10), %v1428_v59  ;;  %950 = vmatpush1.bf16.msra.mxu1 (!%p1188_p10), %v1429_v60  ;;  %v1435_v0 = vld [vmem:[%s2006_s14 + $0x28] ss:$16 sps:$4 sm:$0xff] (!%p1188_p10)   ;;  %v1436_v1 = vld [vmem:[%s2006_s14 + $0x44] ss:$16 sps:$4 sm:$0xff] (!%p1188_p10)   ;;  %v1438_v2 = vld [vmem:[%s2006_s14 + $0x4c] ss:$16 sps:$4 sm:$0xff] (!%p1188_p10)  }
 0x1ac   : > { %910 = vmatprep.subr.bf16.mxu0 (!%p1188_p10), %v1430_v61  ;;  %951 = vmatprep.subr.bf16.mxu1 (!%p1188_p10), %v1432_v62  ;;  %v1440_v3 = vld [vmem:[%s2006_s14 + $0x40] ss:$16 sps:$4 sm:$0xff] (!%p1188_p10)   ;;  %v1441_v4 = vld [vmem:[%s2006_s14 + $0x48] ss:$16 sps:$4 sm:$0xff] (!%p1188_p10)   ;;  %v1442_v5 = vld [vmem:[%s2006_s14 + $0x64] ss:$16 sps:$4 sm:$0xff] (!%p1188_p10)  }
 0x1ad   : > { %v1444_v6 = vld [vmem:[%s2006_s14 + $0x6c] ss:$16 sps:$4 sm:$0xff] (!%p1188_p10)   ;;  %v1446_v7 = vld [vmem:[%s2006_s14 + $0x60] ss:$16 sps:$4 sm:$0xff] (!%p1188_p10)   ;;  %v1447_v8 = vld [vmem:[%s2006_s14 + $0x68] ss:$16 sps:$4 sm:$0xff] (!%p1188_p10)  }
 0x1ae   : > { %v1448_v9 = vld [vmem:[%s2006_s14 + $0x84] ss:$16 sps:$4 sm:$0xff] (!%p1188_p10)   ;;  %v1450_v10 = vld [vmem:[%s2006_s14 + $0x8c] ss:$16 sps:$4 sm:$0xff] (!%p1188_p10)   ;;  %v1452_v11 = vld [vmem:[%s2006_s14 + $0x80] ss:$16 sps:$4 sm:$0xff] (!%p1188_p10)  }
 0x1af   : > { %911 = vmatpush1.bf16.msra.mxu0 (!%p1188_p10), %v1434_v63  ;;  %952 = vmatpush1.bf16.msra.mxu1 (!%p1188_p10), %v1435_v0  ;;  %v1453_v12 = vld [vmem:[%s2006_s14 + $0x88] ss:$16 sps:$4 sm:$0xff] (!%p1188_p10)   ;;  %v1454_v13 = vld [vmem:[%s2006_s14 + $0xa4] ss:$16 sps:$4 sm:$0xff] (!%p1188_p10)   ;;  %v1456_v14 = vld [vmem:[%s2006_s14 + $0xac] ss:$16 sps:$4 sm:$0xff] (!%p1188_p10)  }
 0x1b0   : > { %912 = vmatprep.subr.bf16.mxu0 %v1436_v1  ;;  %953 = vmatprep.subr.bf16.mxu1 %v1438_v2  ;;  %v1458_v15 = vld [vmem:[%s2006_s14 + $0xa0] ss:$16 sps:$4 sm:$0xff]   ;;  %v1459_v16 = vld [vmem:[%s2006_s14 + $0xa8] ss:$16 sps:$4 sm:$0xff]   ;;  %v1460_v17 = vld [vmem:[%s2006_s14 + $0xc4] ss:$16 sps:$4 sm:$0xff]  }
 0x1b1   : > { %v1462_v18 = vld [vmem:[%s2006_s14 + $0xcc] ss:$16 sps:$4 sm:$0xff]   ;;  %v1464_v19 = vld [vmem:[%s2006_s14 + $0xc0] ss:$16 sps:$4 sm:$0xff]   ;;  %v1465_v20 = vld [vmem:[%s2006_s14 + $0xc8] ss:$16 sps:$4 sm:$0xff]  }
 0x1b2   : > { %v1466_v21 = vld [vmem:[%s2006_s14 + $0xe4] ss:$16 sps:$4 sm:$0xff]   ;;  %v1468_v22 = vld [vmem:[%s2006_s14 + $0xec] ss:$16 sps:$4 sm:$0xff]   ;;  %v1470_v23 = vld [vmem:[%s2006_s14 + $0xe0] ss:$16 sps:$4 sm:$0xff]  }
 0x1b3   : > { %913 = vmatpush1.bf16.msra.mxu0 %v1440_v3  ;;  %954 = vmatpush1.bf16.msra.mxu1 %v1441_v4  ;;  %v1471_v24 = vld [vmem:[%s2006_s14 + $0xe8] ss:$16 sps:$4 sm:$0xff]   ;;  %v715_v25 = vld [vmem:[#allocation3] sm:$0xf] }
 0x1b4   : > { %914 = vmatprep.subr.bf16.mxu0 %v1442_v5  ;;  %955 = vmatprep.subr.bf16.mxu1 %v1444_v6 }
 0x1b7   : > { %915 = vmatpush1.bf16.msra.mxu0 %v1446_v7  ;;  %956 = vmatpush1.bf16.msra.mxu1 %v1447_v8 }
 0x1b8   : > { %916 = vmatprep.subr.bf16.mxu0 %v1448_v9  ;;  %957 = vmatprep.subr.bf16.mxu1 %v1450_v10 }
 0x1bb   : > { %917 = vmatpush1.bf16.msra.mxu0 %v1452_v11  ;;  %958 = vmatpush1.bf16.msra.mxu1 %v1453_v12 }
 0x1bc   : > { %918 = vmatprep.subr.bf16.mxu0 %v1454_v13  ;;  %959 = vmatprep.subr.bf16.mxu1 %v1456_v14 }
 0x1bf   : > { %919 = vmatpush1.bf16.msra.mxu0 %v1458_v15  ;;  %960 = vmatpush1.bf16.msra.mxu1 %v1459_v16 }
 0x1c0   : > { %920 = vmatprep.subr.bf16.mxu0 %v1460_v17  ;;  %961 = vmatprep.subr.bf16.mxu1 %v1462_v18 }
 0x1c3   : > { %921 = vmatpush1.bf16.msra.mxu0 %v1464_v19  ;;  %962 = vmatpush1.bf16.msra.mxu1 %v1465_v20 }
 0x1c4   : > { %922 = vmatprep.subr.bf16.mxu0 %v1466_v21  ;;  %963 = vmatprep.subr.bf16.mxu1 %v1468_v22 }
 0x1c7   : > { %923 = vmatpush1.bf16.msra.mxu0 %v1470_v23  ;;  %964 = vmatpush1.bf16.msra.mxu1 %v1471_v24 }
 0x1ca   : > { %941 = vmatmul.mubr.bf16.vlgmr.msra.gmra.mrb[0].mxu0 %v715_v25  ;;  %982 = vmatmul.mubr.bf16.vlgmr.msra.gmra.mrb[0].mxu1 %v715_v25 }
 0x29d   : > { %v942_v26 = vpop.f32.mrb[0].mxu0  ;;  %v983_v27 = vpop.f32.mrb[0].mxu1 }
 0x29e   : > { %990 = vst [vmem:[%s2017_s11] sm:$0xff] %v942_v26  ;;  %992 = vst [vmem:[%s2017_s11 + $0x10] sm:$0xff] %v983_v27  ;;  %v944_v28 = vpop.f32.mrb[1].mxu0  ;;  %v985_v29 = vpop.f32.mrb[1].mxu1 }
 0x29f   : > { %991 = vst [vmem:[%s2017_s11 + $0x8] sm:$0xff] %v944_v28  ;;  %993 = vst [vmem:[%s2017_s11 + $0x18] sm:$0xff] %v985_v29  ;;  %v946_v30 = vpop.f32.mrb[2].mxu0  ;;  %v987_v31 = vpop.f32.mrb[2].mxu1 }
 0x2a0   : > { %v947_v32 = vpop.f32.mrb[3].mxu0  ;;  %v988_v33 = vpop.f32.mrb[3].mxu1 }
 0x2a1 PF: > { %s1002_s27 = smul.u32 %s1676_s21, %s1680_s22  ;;  %s1010_s7 = sshll.u32 %s2017_s11, 4  ;;  %s2102_s7 = int_to_ptr.vmem [resolvable:$true] %s1010_s7 }
 0x2a2   : > { %s995_s5 = scalar_lea.sflag [#allocation6], %s2003_s13  ;;  %s1562_s12 = scalar_lea.vmem %s2102_s7, 512 }
 0x2a3   : > { %s1229_s18 = sshll.u32 %s1002_s27, 9  ;;  %p1563_p13 = scmp.ne.s32.totalorder %s2102_s7, %s1562_s12 }
 0x2a4   : > { %s1008_s24 = scalar_lea.hbm %s2165_s4, %s1229_s18  ;;  %p2199_p0 = scmp.ne.s32.totalorder %s2193_s1, 0 }
 0x2a5   : > { %s1703_s30 = smov [#allocation10]  }
 0x2a6   : > { %p1564_p9 = pnand %p1563_p13, %p2199_p0  ;;  %s1566_s29 = sshll.u32 %s1703_s30, 4  ;;  %s1567_s29 = int_to_ptr.vmem [resolvable:$false] %s1566_s29 }
 0x2a7   : > { %s1568_s21 = scalar_lea.vmem %s1567_s29, 1024  ;;  %p1569_p5 = scmp.lt.s32.totalorder %s2102_s7, %s1567_s29 }
 0x2a8   : > { %p1565_p4 = pneg %p1564_p9  ;;  %p1570_p7 = scmp.lt.s32.totalorder %s1568_s21, %s1562_s12 }
 0x2aa   : > { %p1571_p3 = por %p1570_p7, %p1569_p5 }
 0x2ac   : > { %p1572_p12 = pnand %p1571_p3, %p1565_p4 }
 0x2ae   : > { %1575 = shalt.err (!%p1572_p12)
}
 0x2af   : > { %s1576_s22 = scalar_lea.hbm %s1008_s24, 512  ;;  %s1580_s14 = scalar_lea.hbm %s2165_s4, 1024 }
 0x2b0   : > { %p1577_p1 = scmp.ne.s32.totalorder %s1008_s24, %s1576_s22  ;;  %p1581_p11 = scmp.lt.u32.totalorder %s1008_s24, %s2165_s4 }
 0x2b1   : > { %p1582_p8 = scmp.lt.u32.totalorder %s1580_s14, %s1576_s22  ;;  %p1584_p13 = scmp.lt.u32.totalorder %s1576_s22, %s1008_s24 }
 0x2b2   : > { %p1578_p2 = pnand %p1577_p1, %p2199_p0 }
 0x2b3   : > { %p1583_p10 = por %p1582_p8, %p1581_p11 }
 0x2b4   : > { %p1579_p6 = pneg %p1578_p2 }
 0x2b5   : > { %p1585_p9 = por %p1584_p13, %p1583_p10 }
 0x2b7   : > { %p1586_p4 = pnand %p1585_p9, %p1579_p6 }
 0x2b9   : > { %1589 = shalt.err (!%p1586_p4)
}
 0x2ba   : > { %1280 = dma.vmem_to_hbm [thread:$0]  (%p2199_p0), %s2102_s7, 512, %s1008_s24, %s995_s5  }
 0x2bb PF: > { %p1297_p5 = scmp.ge.s32.totalorder %s1692_s25, 2  ;;  %s1022_s9 = sand.u32 1, %s1652_s15  }
 0x2bc   : > { %p2200_p7 = scmp.ne.s32.totalorder %s2194_s20, 0  ;;  %s1023_s6 = scalar_lea.sflag [#allocation6], %s1022_s9 }
 0x2be   : > { %p1293_p3 = pnand %p1297_p5, %p2200_p7 }
 0x2c0   : > { %1647 = dma.done.wait (!%p1293_p3), %s1023_s6, 512  }
 0x2c1   : > { %1649 = vsyncadd (!%p1293_p3), %s1023_s6, 4294966784  ;;  %s23_s25 = sadd.s32 1, %s1692_s25   ;;  %s2201_s1 = sld [smem:[#allocation15_spill]] }
 0x2c2   : > { %p20_p12 = scmp.ge.s32.totalorder %s23_s25, 6   ;;  %s2202_s20 = sld [smem:[#allocation20_spill]] }
 0x2c3   : > { %s2203_s21 = sld [smem:[#allocation16_spill]]  ;;  %s2204_s22 = sld [smem:[#allocation17_spill]] }
 0x2c4   : > { %s2205_s23 = sld [smem:[#allocation18_spill]]  ;;  %s2206_s24 = sld [smem:[#allocation19_spill]] }
 0x2c5   : > { %s2207_s15 = smov %s1656_s16  ;;  %s2208_s16 = smov %s1660_s17 }
 0x2c6   : > { %s2209_s17 = smov %s1921_s8  ;;  %s2210_s18 = smov %s1668_s19 }
 0x2c7   : > { %s2211_s19 = smov %s2201_s1  ;;  %22 = sbr.rel (!%p20_p12) target bundleno = 13 (0xd), region = 121 }
 0x2ce   :  { %1028 = vsyncpa [#allocation5], 1 }
 0x2cf   :  { %1030 = vsyncpa [#allocation5 + $0x1], 1 }
 0x2d0   :  { %1031 = vsyncpa [#allocation8], 1 }
 0x2d1   :  { %1033 = vsyncpa [#allocation8 + $0x1], 1 }
 0x2d2   :  { %1034 = vsyncpa [#allocation6], 1 }
 0x2d3   :  { %1036 = vsyncpa [#allocation6 + $0x1], 1 }

</bundles_post_ra>
